<compile_context>
chip_gen: v7x
topology: tpu7x:2x2x1
jax: 0.10.0
libtpu: 0.0.40
codegen_flags: <defaults>
</compile_context>

<pallas_src>
import functools

import jax
import jax.numpy as jnp
from jax.experimental import pallas as pl
from jax.experimental.pallas import tpu as pltpu

_MIB = 1 << 20
_TARGET_BLOCK_BYTES = 2 * _MIB   # ~1-4 MiB blocks hit >=85% of HBM roofline
_TILE_CAP_BYTES = 2 * _MIB       # spatial tile cap for the two-pass fallback
_MARGIN_BYTES = 2 * _MIB         # headroom for Mosaic internal scratch etc.


def _vmem_limit_bytes():
    """Generation-aware VMEM budget.

    v7x has only 64 MiB/TC -> request 75% so Mosaic keeps room for its own
    scratch; v5e/v6e have 128 MiB -> 112 MiB widens fused-path eligibility
    (default scoped limits are only 16/32 MiB).
    """
    try:
        cap = int(pltpu.get_tpu_info().vmem_capacity_bytes)
    except Exception:
        cap = 64 * _MIB  # assume the smallest generation (v7x)
    if cap <= 64 * _MIB:
        return (cap * 3) // 4
    return min(cap - 16 * _MIB, 112 * _MIB)


def _pick_batch_block(n, slab_bytes, target_bytes):
    """Largest divisor Bn of n such that the (Bn, C, HW) block stays ~<=2 MiB
    and the grid keeps at least 2 steps (so v7x megacore has work to split)."""
    if n <= 1:
        return 1
    best = 1
    for bn in range(1, n // 2 + 1):
        if n % bn == 0 and bn * slab_bytes <= target_bytes:
            best = bn
    return best


def _pick_spatial_tile(hw, c, itemsize):
    """Multiple-of-128 lane tile with block size capped at ~2 MiB.

    Prefers an exact divisor of hw; if none exists (e.g. hw = 56*56 = 3136) it
    returns a 128-multiple tile and the pool kernel masks the tail block.
    """
    if hw <= 128:
        return hw
    max_t = max(128, _TILE_CAP_BYTES // (c * itemsize))
    max_t = min(max_t, hw)
    max_t = (max_t // 128) * 128
    for t in range(max_t, 0, -128):
        if hw % t == 0:
            return t
    return max_t


# --------------------------- kernels ---------------------------------------


def _se_fused_kernel(x_ref, w1_ref, w2_ref, o_ref, *, inv_hw):
    # x_ref / o_ref: (Bn, C, HW)  -- channels on sublanes, spatial on lanes.
    pooled = jnp.sum(x_ref[...].astype(jnp.float32), axis=-1) * inv_hw        # (Bn, C)
    h = jnp.maximum(
        jnp.dot(pooled, w1_ref[...].astype(jnp.float32),
                preferred_element_type=jnp.float32), 0.0)                     # (Bn, Cr)
    g = jax.nn.sigmoid(
        jnp.dot(h, w2_ref[...].astype(jnp.float32),
                preferred_element_type=jnp.float32))                          # (Bn, C)
    # Multiply in fp32 (gate stays fp32), cast only the product back.
    o_ref[...] = (x_ref[...] * g[:, :, None]).astype(o_ref.dtype)


def _se_fused_1buf_kernel(x_hbm, w1_ref, w2_ref, o_hbm, buf, sem, *, inv_hw):
    # Single-buffered manual-DMA fused path: exactly one (1, C, HW) slab lives
    # in VMEM at a time.  Used when double-buffered full-sample blocks do not
    # fit (e.g. v7x 64 MiB VMEM) but a single slab does -> still one HBM read
    # and one HBM write of x, instead of the two-pass path's 1.5x traffic.
    n = pl.program_id(0)
    cp_in = pltpu.make_async_copy(x_hbm.at[pl.ds(n, 1)], buf, sem)
    cp_in.start()
    cp_in.wait()
    pooled = jnp.sum(buf[...].astype(jnp.float32), axis=-1) * inv_hw          # (1, C)
    h = jnp.maximum(
        jnp.dot(pooled, w1_ref[...].astype(jnp.float32),
                preferred_element_type=jnp.float32), 0.0)                     # (1, Cr)
    g = jax.nn.sigmoid(
        jnp.dot(h, w2_ref[...].astype(jnp.float32),
                preferred_element_type=jnp.float32))                          # (1, C)
    buf[...] = (buf[...] * g[:, :, None]).astype(buf.dtype)
    cp_out = pltpu.make_async_copy(buf, o_hbm.at[pl.ds(n, 1)], sem)
    cp_out.start()
    cp_out.wait()


def _pool_kernel(x_ref, p_ref, *, hw, t_hw):
    # x_ref: (1, C, t_hw); p_ref: (1, C, 1) fp32 running sum (resident over k).
    k = pl.program_id(1)

    @pl.when(k == 0)
    def _():
        p_ref[...] = jnp.zeros_like(p_ref)

    xb = x_ref[...].astype(jnp.float32)
    if hw % t_hw != 0:
        # Masked tail for non-128-divisible spatial extents (cdiv grid).
        lane = jax.lax.broadcasted_iota(jnp.int32, xb.shape, 2)
        xb = jnp.where(lane + k * t_hw < hw, xb, 0.0)
    p_ref[...] += jnp.sum(xb, axis=-1, keepdims=True)


def _scale_gate_kernel(p_ref, x_ref, w1_ref, w2_ref, o_ref, s_ref, *, inv_hw):
    # p_ref: (1, C, 1) fp32 channel sums; x_ref/o_ref: (1, C, t_hw);
    # w1_ref: (C, Cr); w2_ref: (Cr, C); s_ref: (1, C, 1) fp32 VMEM scratch.
    # Gate is computed once per sample (k == 0) and reused across spatial tiles
    # -- no XLA dispatches between the passes, no HBM round trip of the gate.
    @pl.when(pl.program_id(1) == 0)
    def _():
        pooled = p_ref[...][..., 0] * inv_hw                                  # (1, C)
        h = jnp.maximum(
            jnp.dot(pooled, w1_ref[...].astype(jnp.float32),
                    preferred_element_type=jnp.float32), 0.0)                 # (1, Cr)
        g = jax.nn.sigmoid(
            jnp.dot(h, w2_ref[...].astype(jnp.float32),
                    preferred_element_type=jnp.float32))                      # (1, C)
        s_ref[...] = g[:, :, None]

    o_ref[...] = (x_ref[...] * s_ref[...]).astype(o_ref.dtype)


# --------------------------- wrapper ----------------------------------------


def se_module(x_nchw, w1, w2, *, force_two_pass=False, force_single_buffer=False,
              spatial_tile=None, batch_block=None):
    """SEModule forward.

    x_nchw: (N, C, H, W)
    w1    : (C, Cr)  == fc1.weight[:, :, 0, 0].T   (Conv2d C -> Cr, 1x1, no bias)
    w2    : (Cr, C)  == fc2.weight[:, :, 0, 0].T   (Conv2d Cr -> C, 1x1, no bias)
    returns (N, C, H, W)
    """
    N, C, H, W = x_nchw.shape
    Cr = w1.shape[1]
    HW = H * W
    itemsize = jnp.dtype(x_nchw.dtype).itemsize
    inv_hw = 1.0 / HW

    # (N, C, H, W) -> (N, C, H*W): contiguous-dim reshape, no data movement.
    x = x_nchw.reshape(N, C, HW)

    budget = _vmem_limit_bytes()
    slab_bytes = C * HW * itemsize                       # one sample's (C, HW) slab
    w_bytes = (C * Cr + Cr * C) * jnp.dtype(w1.dtype).itemsize

    if not force_two_pass:
        if batch_block is not None:
            assert N % batch_block == 0, "batch_block must divide N"
            bn = batch_block
        else:
            bn = _pick_batch_block(N, slab_bytes, _TARGET_BLOCK_BYTES)

        # (a) Auto-pipelined fused path: double-buffered (Bn, C, HW) in + out.
        if (not force_single_buffer) and (
                4 * bn * slab_bytes + 2 * w_bytes + _MARGIN_BYTES <= budget):
            cost = pl.CostEstimate(
                flops=N * (2 * C * HW + 2 * C * Cr + 2 * Cr * C),
                transcendentals=N * C,
                bytes_accessed=2 * N * slab_bytes + w_bytes)
            out = pl.pallas_call(
                functools.partial(_se_fused_kernel, inv_hw=inv_hw),
                out_shape=jax.ShapeDtypeStruct((N, C, HW), x.dtype),
                grid_spec=pltpu.PrefetchScalarGridSpec(
                    num_scalar_prefetch=0,
                    grid=(N // bn,),
                    in_specs=[
                        pl.BlockSpec((bn, C, HW), lambda i: (i, 0, 0)),
                        pl.BlockSpec((C, Cr), lambda i: (0, 0)),
                        pl.BlockSpec((Cr, C), lambda i: (0, 0)),
                    ],
                    out_specs=pl.BlockSpec((bn, C, HW), lambda i: (i, 0, 0)),
                ),
                compiler_params=pltpu.CompilerParams(
                    dimension_semantics=("parallel",),
                    vmem_limit_bytes=budget),
                cost_estimate=cost,
            )(x, w1, w2)
            return out.reshape(N, C, H, W)

        # (b) Manual single-buffered fused path (one slab resident in VMEM).
        if slab_bytes + 2 * w_bytes + _MARGIN_BYTES <= budget:
            out = pl.pallas_call(
                functools.partial(_se_fused_1buf_kernel, inv_hw=inv_hw),
                out_shape=jax.ShapeDtypeStruct((N, C, HW), x.dtype),
                grid_spec=pltpu.PrefetchScalarGridSpec(
                    num_scalar_prefetch=0,
                    grid=(N,),
                    in_specs=[
                        pl.BlockSpec(memory_space=pl.ANY),
                        pl.BlockSpec((C, Cr), lambda n: (0, 0)),
                        pl.BlockSpec((Cr, C), lambda n: (0, 0)),
                    ],
                    out_specs=pl.BlockSpec(memory_space=pl.ANY),
                    scratch_shapes=[
                        pltpu.VMEM((1, C, HW), x.dtype),
                        pltpu.SemaphoreType.DMA(()),
                    ],
                ),
                compiler_params=pltpu.CompilerParams(
                    dimension_semantics=("parallel",),
                    vmem_limit_bytes=budget),
                cost_estimate=pl.CostEstimate(
                    flops=N * (2 * C * HW + 2 * C * Cr + 2 * Cr * C),
                    transcendentals=N * C,
                    bytes_accessed=2 * N * slab_bytes + w_bytes),
            )(x, w1, w2)
            return out.reshape(N, C, H, W)

    # ---------------- Two-pass fallback (slab does not fit VMEM) -------------
    t_hw = spatial_tile if spatial_tile is not None else _pick_spatial_tile(
        HW, C, itemsize)
    kt = pl.cdiv(HW, t_hw)

    # Pass 1: per-sample fp32 channel sums; spatial (lane) axis is the
    # reduction axis (last grid axis, "arbitrary"); tail block is masked.
    pooled_sum = pl.pallas_call(
        functools.partial(_pool_kernel, hw=HW, t_hw=t_hw),
        out_shape=jax.ShapeDtypeStruct((N, C, 1), jnp.float32),
        grid_spec=pltpu.PrefetchScalarGridSpec(
            num_scalar_prefetch=0,
            grid=(N, kt),
            in_specs=[pl.BlockSpec((1, C, t_hw), lambda n, k: (n, 0, k))],
            out_specs=pl.BlockSpec((1, C, 1), lambda n, k: (n, 0, 0)),
        ),
        compiler_params=pltpu.CompilerParams(
            dimension_semantics=("parallel", "arbitrary"),
            vmem_limit_bytes=budget),
        cost_estimate=pl.CostEstimate(
            flops=N * C * HW, transcendentals=0,
            bytes_accessed=N * slab_bytes + N * C * 4),
    )(x)

    # Pass 2: gate (fc1/ReLU/fc2/sigmoid) computed in-kernel at k == 0 into a
    # VMEM scratch, then lane-broadcast scale over the spatial tiles.
    out = pl.pallas_call(
        functools.partial(_scale_gate_kernel, inv_hw=inv_hw),
        out_shape=jax.ShapeDtypeStruct((N, C, HW), x.dtype),
        grid_spec=pltpu.PrefetchScalarGridSpec(
            num_scalar_prefetch=0,
            grid=(N, kt),
            in_specs=[
                pl.BlockSpec((1, C, 1), lambda n, k: (n, 0, 0)),
                pl.BlockSpec((1, C, t_hw), lambda n, k: (n, 0, k)),
                pl.BlockSpec((C, Cr), lambda n, k: (0, 0)),
                pl.BlockSpec((Cr, C), lambda n, k: (0, 0)),
            ],
            out_specs=pl.BlockSpec((1, C, t_hw), lambda n, k: (n, 0, k)),
            scratch_shapes=[pltpu.VMEM((1, C, 1), jnp.float32)],
        ),
        compiler_params=pltpu.CompilerParams(
            dimension_semantics=("parallel", "arbitrary"),
            vmem_limit_bytes=budget),
        cost_estimate=pl.CostEstimate(
            flops=N * (C * HW + 2 * C * Cr + 2 * Cr * C),
            transcendentals=N * C,
            bytes_accessed=2 * N * slab_bytes + N * C * 4 + w_bytes),
    )(pooled_sum, x, w1, w2)
    return out.reshape(N, C, H, W)


# --------------------------- reference & test --------------------------------


def _reference(x_nchw, w1, w2):
    """Plain-JAX reference of the same forward pass."""
    pooled = jnp.mean(x_nchw, axis=(2, 3))                    # (N, C)
    h = jnp.maximum(pooled @ w1, 0.0)                         # (N, Cr)
    s = jax.nn.sigmoid(h @ w2)                                # (N, C)
    return x_nchw * s[:, :, None, None]


if __name__ == "__main__":
    # Shapes consistent with SEModule(channels=32, reduction=4).
    N, C, H, W = 4, 32, 16, 16
    reduction = 4
    Cr = C // reduction

    key = jax.random.PRNGKey(0)
    kx, k1, k2 = jax.random.split(key, 3)

    x = jax.random.normal(kx, (N, C, H, W), dtype=jnp.float32)

    # fc1: xavier_uniform for a (Cr, C, 1, 1) conv weight -> bound = sqrt(6/(C+Cr))
    bound1 = (6.0 / (C + Cr)) ** 0.5
    w1 = jax.random.uniform(k1, (C, Cr), minval=-bound1, maxval=bound1,
                            dtype=jnp.float32)
    # fc2: PyTorch default Conv2d init (kaiming_uniform, a=sqrt(5)) -> 1/sqrt(fan_in)
    bound2 = 1.0 / (Cr ** 0.5)
    w2 = jax.random.uniform(k2, (Cr, C), minval=-bound2, maxval=bound2,
                            dtype=jnp.float32)

    ref = _reference(x, w1, w2)

    # 1) Default: batched auto-pipelined fused path (Bn=2 -> grid=(2,)).
    out = jax.block_until_ready(se_module(x, w1, w2))
    assert out.shape == (N, C, H, W)
    assert jnp.allclose(out, ref, atol=2e-5, rtol=2e-5), "fused path mismatch"

    # 2) Manual single-buffered fused path (v7x medium-slab contingency).
    out1b = jax.block_until_ready(se_module(x, w1, w2, force_single_buffer=True))
    assert jnp.allclose(out1b, ref, atol=2e-5, rtol=2e-5), "1-buf path mismatch"

    # 3) Two-pass path with a non-128-divisible spatial extent (masked tail).
    x2 = jax.random.normal(kx, (N, C, 14, 14), dtype=jnp.float32)
    ref2 = _reference(x2, w1, w2)
    out2 = jax.block_until_ready(
        se_module(x2, w1, w2, force_two_pass=True, spatial_tile=128))
    assert jnp.allclose(out2, ref2, atol=2e-5, rtol=2e-5), "two-pass mismatch"

    print("KERNEL_OK")
</pallas_src>

<mosaic_0001>
module attributes {stable_mosaic.version = 11 : i64} {
  func.func @_se_fused_kernel(%arg0: i32, %arg1: memref<2x32x256xf32, #tpu.memory_space<vmem>>, %arg2: memref<32x8xf32, #tpu.memory_space<vmem>>, %arg3: memref<8x32xf32, #tpu.memory_space<vmem>>, %arg4: memref<2x32x256xf32, #tpu.memory_space<vmem>>) attributes {dimension_semantics = [#tpu.dimension_semantics<parallel>], iteration_bounds = array<i64: 2>, scalar_prefetch = 0 : i64, scratch_operands = 0 : i64, tpu.core_type = #tpu.core_type<tc>, window_params = [{transform_indices = @transform_0, window_bounds = array<i64: 2, 32, 256>}, {pipeline_mode = #tpu.pipeline_mode<synchronous>, transform_indices = @transform_1, window_bounds = array<i64: 32, 8>}, {pipeline_mode = #tpu.pipeline_mode<synchronous>, transform_indices = @transform_2, window_bounds = array<i64: 8, 32>}, {transform_indices = @transform_3, window_bounds = array<i64: 2, 32, 256>}]} {
    %c0 = arith.constant 0 : index
    %c0_0 = arith.constant 0 : index
    %c0_1 = arith.constant 0 : index
    %0 = vector.load %arg1[%c0, %c0_0, %c0_1] : memref<2x32x256xf32, #tpu.memory_space<vmem>>, vector<2x32x256xf32>
    %cst = arith.constant dense<0.000000e+00> : vector<2x32xf32>
    %1 = vector.multi_reduction <add>, %0, %cst [2] : vector<2x32x256xf32> to vector<2x32xf32>
    %cst_2 = arith.constant 3.906250e-03 : f32
    %2 = vector.broadcast %cst_2 : f32 to vector<2x32xf32>
    %3 = arith.mulf %1, %2 : vector<2x32xf32>
    %c0_3 = arith.constant 0 : index
    %c0_4 = arith.constant 0 : index
    %4 = vector.load %arg2[%c0_3, %c0_4] : memref<32x8xf32, #tpu.memory_space<vmem>>, vector<32x8xf32>
    %cst_5 = arith.constant dense<0.000000e+00> : vector<2x8xf32>
    %5 = tpu.matmul %3, %4, %cst_5 {dimension_numbers = #tpu.dot_dimension_numbers<[1], [0], [0], [1], [0, 0, 1, 1], [], []>} : vector<2x32xf32>, vector<32x8xf32>, vector<2x8xf32> -> vector<2x8xf32>
    %cst_6 = arith.constant 0.000000e+00 : f32
    %6 = vector.broadcast %cst_6 : f32 to vector<2x8xf32>
    %7 = arith.maximumf %5, %6 : vector<2x8xf32>
    %c0_7 = arith.constant 0 : index
    %c0_8 = arith.constant 0 : index
    %8 = vector.load %arg3[%c0_7, %c0_8] : memref<8x32xf32, #tpu.memory_space<vmem>>, vector<8x32xf32>
    %cst_9 = arith.constant dense<0.000000e+00> : vector<2x32xf32>
    %9 = tpu.matmul %7, %8, %cst_9 {dimension_numbers = #tpu.dot_dimension_numbers<[1], [0], [0], [1], [0, 0, 1, 1], [], []>} : vector<2x8xf32>, vector<8x32xf32>, vector<2x32xf32> -> vector<2x32xf32>
    %10 = arith.negf %9 : vector<2x32xf32>
    %11 = math.exp %10 : vector<2x32xf32>
    %cst_10 = arith.constant 1.000000e+00 : f32
    %12 = vector.broadcast %cst_10 : f32 to vector<2x32xf32>
    %13 = arith.addf %12, %11 : vector<2x32xf32>
    %14 = arith.divf %12, %13 : vector<2x32xf32>
    %c0_11 = arith.constant 0 : index
    %c0_12 = arith.constant 0 : index
    %c0_13 = arith.constant 0 : index
    %15 = vector.load %arg1[%c0_11, %c0_12, %c0_13] : memref<2x32x256xf32, #tpu.memory_space<vmem>>, vector<2x32x256xf32>
    %16 = vector.shape_cast %14 : vector<2x32xf32> to vector<2x32x1xf32>
    %17 = vector.broadcast %16 : vector<2x32x1xf32> to vector<2x32x256xf32>
    %18 = arith.mulf %15, %17 : vector<2x32x256xf32>
    %c0_14 = arith.constant 0 : index
    %c0_15 = arith.constant 0 : index
    %c0_16 = arith.constant 0 : index
    %19 = vector.load %arg4[%c0_14, %c0_15, %c0_16] : memref<2x32x256xf32, #tpu.memory_space<vmem>>, vector<2x32x256xf32>
    tpu.vector_store %arg4[%c0_14, %c0_15, %c0_16], %18 {strides = array<i32>} : memref<2x32x256xf32, #tpu.memory_space<vmem>>, vector<2x32x256xf32>,
    return
  }
  func.func @transform_0(%arg0: i32) -> (i32, i32, i32) {
    %c0_i32 = arith.constant 0 : i32
    %c0_i32_0 = arith.constant 0 : i32
    %c0_i32_1 = arith.constant 0 : i32
    return %arg0, %c0_i32, %c0_i32_0 : i32, i32, i32
  }
  func.func @transform_1(%arg0: i32) -> (i32, i32) {
    %c0_i32 = arith.constant 0 : i32
    %c0_i32_0 = arith.constant 0 : i32
    %c0_i32_1 = arith.constant 0 : i32
    return %c0_i32, %c0_i32_0 : i32, i32
  }
  func.func @transform_2(%arg0: i32) -> (i32, i32) {
    %c0_i32 = arith.constant 0 : i32
    %c0_i32_0 = arith.constant 0 : i32
    %c0_i32_1 = arith.constant 0 : i32
    return %c0_i32, %c0_i32_0 : i32, i32
  }
  func.func @transform_3(%arg0: i32) -> (i32, i32, i32) {
    %c0_i32 = arith.constant 0 : i32
    %c0_i32_0 = arith.constant 0 : i32
    %c0_i32_1 = arith.constant 0 : i32
    return %arg0, %c0_i32, %c0_i32_0 : i32, i32, i32
  }
}

</mosaic_0001>

<bundles_post_ra>
// kernel: tpu_custom_call.1
= control target key start
LH: loop header
LB: loop body
LE: loop exit
PB: predicated region body
PF: predicated region fallthrough
CT: control target
= control target key end

     0   :  { %8 = vsyncpa [#allocation3], 0  ;;  %s1113_s0 = inlined_call_operand.hbm [shape: f32[4,32,256], index: 0, kind: input, shape index: {}]   ;;  %s1114_s1 = inlined_call_operand.vmem [shape: f32[32,8], index: 1, kind: input, shape index: {}]   ;;  %s1115_s2 = inlined_call_operand.vmem [shape: f32[8,32], index: 2, kind: input, shape index: {}]   ;;  %s1116_s3 = inlined_call_operand.hbm [shape: f32[4,32,256], index: 3, kind: output, shape index: {}]  }
   0x1   :  { %10 = vsyncpa [#allocation3 + $0x1], 0 }
   0x2   :  { %11 = vsyncpa [#allocation4], 0 }
   0x3   :  { %13 = vsyncpa [#allocation4 + $0x1], 0  ;;  %s849_s12 = smov 0   ;;  %s851_s13 = smov 0  }
   0x4   :  { %s853_s14 = smov 0   ;;  %s855_s15 = smov 0  }
   0x5 LB: > { %s870_s16 = sadd.s32 4294967295, %s818_s15   ;;  %s613_s17 = sadd.s32 4294967294, %s818_s15   ;;  %s818_s15 = sphi %s855_s15, %s1129_s15   ;;  %s814_s14 = sphi %s853_s14, %s1128_s14   ;;  %s810_s13 = sphi %s851_s13, %s1127_s13   ;;  %s806_s12 = sphi %s849_s12, %s1126_s12  }
   0x6   : > { %s874_s18 = sadd.s32 1, %s818_s15   ;;  %s26_s19 = sadd.s32 1, %s814_s14 }
   0x7   : > { %s23_s20 = ssub.s32 %s818_s15, %s874_s18  ;;  %p33_p0 = scmp.ne.s32.totalorder %s814_s14, %s810_s13 }
   0x8   : > { %p24_p1 = scmp.eq.s32.totalorder %s23_s20, 0  ;;  %p34_p2 = scmp.eq.s32.totalorder %s818_s15, 0 }
   0x9   : > { %p39_p3 = scmp.ne.s32.totalorder %s810_s13, %s806_s12  ;;  %p40_p4 = scmp.eq.s32.totalorder %s870_s16, 0 }
   0xa   : > { %s886_s21 = scalar_select %p24_p1, %s814_s14, %s26_s19  }
   0xb   : > { %p888_p5 = por %p34_p2, %p33_p0  ;;  %p892_p6 = por %p40_p4, %p39_p3 }
   0xc   : > { %p105_p7 = scmp.eq.s32.totalorder %s870_s16, 1  ;;  %p111_p8 = scmp.eq.s32.totalorder %s613_s17, 1 }
   0xd   : > { %p677_p10 = scmp.lt.s32.totalorder %s818_s15, 2  ;;  %s137_s26 = sand.u32 1, %s814_s14  }
   0xe   : > { %p899_p11 = por %p105_p7, %p33_p0  ;;  %p903_p12 = por %p111_p8, %p39_p3 }
   0xf   : > { %s633_s27 = sshll.u32 %s818_s15, 11  ;;  %s616_s28 = sshll.u32 %s137_s26, 7 }
  0x10   : > { %s1120_s24 = scalar_select %p899_p11, 1, 0 }
  0x11   : > { %s1121_s25 = scalar_select %p903_p12, 1, 0 }
  0x12   : > { %s912_s4 = scalar_lea.hbm %s1113_s0, %s633_s27  ;;  %s141_s5 = scalar_lea.vmem [#allocation2], %s616_s28 }
  0x13   : > { %s149_s6 = sshll.u32 %s141_s5, 4  ;;  %p916_p13 = pnand %p677_p10, %p888_p5  ;;  %s920_s6 = int_to_ptr.vmem [resolvable:$true] %s149_s6 }
  0x14   : > { %s922_s8 = scalar_lea.sflag [#allocation3], %s137_s26  ;;  %s722_s9 = scalar_lea.hbm %s912_s4, 2048 }
  0x15   : > { %p723_p0 = scmp.ne.s32.totalorder %s912_s4, %s722_s9  ;;  %p724_p1 = pneg %p916_p13 }
  0x16   : > { %s727_s17 = scalar_lea.hbm %s1113_s0, 4096  ;;  %p728_p4 = scmp.lt.u32.totalorder %s912_s4, %s1113_s0 }
  0x17   : > { %p725_p2 = pnand %p724_p1, %p723_p0  ;;  %p729_p5 = scmp.lt.u32.totalorder %s727_s17, %s722_s9 }
  0x18   : > { %p731_p8 = scmp.lt.u32.totalorder %s722_s9, %s912_s4 }
  0x19   : > { %p726_p3 = pneg %p725_p2  ;;  %p730_p7 = por %p729_p5, %p728_p4 }
  0x1b   : > { %p732_p10 = por %p731_p8, %p730_p7 }
  0x1d   : > { %p733_p9 = pnand %p732_p10, %p726_p3 }
  0x1f   : > { %736 = shalt.err (!%p733_p9)
}
  0x20   : > { %s737_s22 = scalar_lea.vmem %s920_s6, 2048  ;;  %s820_s26 = smov [#allocation2]  }
  0x21   : > { %p738_p0 = scmp.ne.s32.totalorder %s920_s6, %s737_s22  ;;  %s742_s27 = sshll.u32 %s820_s26, 4  ;;  %s743_s27 = int_to_ptr.vmem [resolvable:$false] %s742_s27 }
  0x22   : > { %s744_s28 = scalar_lea.vmem %s743_s27, 4096  ;;  %p745_p11 = scmp.lt.s32.totalorder %s920_s6, %s743_s27 }
  0x23   : > { %p740_p2 = pnand %p738_p0, %p724_p1  ;;  %p746_p4 = scmp.lt.s32.totalorder %s744_s28, %s737_s22 }
  0x25   : > { %p741_p12 = pneg %p740_p2  ;;  %p747_p5 = por %p746_p4, %p745_p11 }
  0x27   : > { %p748_p7 = pnand %p747_p5, %p741_p12 }
  0x29   : > { %751 = shalt.err (!%p748_p7)
}
  0x2a   : > { %s821_s29 = smov 256   ;;  %s822_s30 = smov 16  }
  0x2b   : > { %672 = dma.hbm_to_vmem [thread:$0]  (!%p916_p13), %s912_s4, 2048, %s920_s6, %s922_s8, %s821_s29, %s821_s29, %s822_s30  }
  0x2c   : > { %p620_p9 = scmp.ge.s32.totalorder %s818_s15, 1  ;;  %p157_p1 = scmp.lt.s32.totalorder %s818_s15, 3 }
  0x2e   : > { %p158_p3 = pnand %p620_p9, %p157_p1 }
  0x2f   : > { %s953_s5 = sand.u32 (!%p158_p3), 1, %s810_s13  }
  0x30   : > { %161 = sbr.rel (%p158_p3) target bundleno = 822 (0x336), region = 32  ;;  %s621_s9 = sshll.u32 (!%p158_p3), %s953_s5, 7 }
  0x31   : > { %s164_s10 = scalar_lea.sflag (!%p158_p3), [#allocation3], %s953_s5  ;;  %s167_s11 = scalar_lea.vmem (!%p158_p3), [#allocation2], %s621_s9 }
  0x37   : > { %797 = dma.done.wait (%p892_p6), %s164_s10, 2048  }
  0x38   : > { %799 = vsyncadd (%p892_p6), %s164_s10, 4294965248  ;;  %v963_v0 = vld [vmem:[%s167_s11 + $0x40] sm:$0xff]  ;;  %v965_v1 = vld [vmem:[%s167_s11 + $0x48] sm:$0xff]  ;;  %v823_v27 = vmov 0.0|0.0   ;;  %vm824_vm0 = vmmov 0   ;;  %v825_v31 = vmov 0.0   ;;  %v252_v32 = vlaneseq }
  0x39   : > { %v967_v2 = vld [vmem:[%s167_s11] sm:$0xff]  ;;  %v220_v3 = vadd.f32 %v965_v1, %v963_v0  ;;  %v971_v4 = vld [vmem:[%s167_s11 + $0x8] sm:$0xff]  ;;  %v973_v5 = vld [vmem:[%s167_s11 + $0x50] sm:$0xff]  ;;  %659 = vmatprep.subr.bf16.mxu0 %v823_v27  ;;  %651 = vmatprep.mubr.msk.f32.mxu0 %vm824_vm0, %v825_v31  ;;  %vm263_vm1 = vcmask 130112   ;;  %vm270_vm2 = vcmask 195712   ;;  %vm277_vm3 = vcmask 261312  }
  0x3a   : > { %v975_v6 = vld [vmem:[%s167_s11 + $0x58] sm:$0xff]  ;;  %v208_v7 = vadd.f32 %v971_v4, %v967_v2  ;;  %v979_v8 = vld [vmem:[%s167_s11 + $0x10] sm:$0xff]  ;;  %v987_v12 = vld [vmem:[%s167_s11 + $0x60] sm:$0xff]  ;;  %654 = vmatprep.subr.mxu1 %v825_v31  ;;  %656 = vmatprep.mubr.msk.f32.mxu1 %vm824_vm0, %v825_v31  ;;  %v253_v34 = vand.u32 127, %v252_v32  ;;  %v255_v39 = vshrl.u32 %v252_v32, 7  ;;  %vm298_vm4 = vcmask 1041409  }
  0x3b   : > { %v981_v9 = vld [vmem:[%s167_s11 + $0x18] sm:$0xff]  ;;  %221 = vadd.xlane.f32.xlu1 %v220_v3  ;;  %v223_v10 = vadd.f32 %v975_v6, %v973_v5  ;;  %v989_v13 = vld [vmem:[%s167_s11 + $0x68] sm:$0xff]  ;;  %v991_v14 = vld [vmem:[%s167_s11 + $0x20] sm:$0xff]  ;;  %vm300_vm5 = vcmask 261120   ;;  %vm375_vm6 = vcmask 64512   ;;  %s1032_s27 = scalar_lea.vmem [#allocation5], %s621_s9 }
  0x3c   : > { %209 = vadd.xlane.f32.xlu0 %v208_v7  ;;  %v211_v11 = vadd.f32 %v981_v9, %v979_v8  ;;  %v993_v15 = vld [vmem:[%s167_s11 + $0x28] sm:$0xff]  ;;  %v226_v16 = vadd.f32 %v989_v13, %v987_v12  ;;  %v999_v18 = vld [vmem:[%s167_s11 + $0x70] sm:$0xff]  ;;  %v1001_v19 = vld [vmem:[%s167_s11 + $0x78] sm:$0xff]  ;;  %v258_v36 = vadd.s32 4294967288, %v253_v34  ;;  %v265_v38 = vadd.s32 4294967280, %v253_v34  ;;  %s635_s28 = sshll.u32 %s870_s16, 11 }
  0x3d   : > { %v214_v17 = vadd.f32 %v993_v15, %v991_v14  ;;  %v1003_v20 = vld [vmem:[%s167_s11 + $0x30] sm:$0xff]  ;;  %v1005_v21 = vld [vmem:[%s167_s11 + $0x38] sm:$0xff]  ;;  %v229_v22 = vadd.f32 %v1001_v19, %v999_v18  ;;  %v240_v24 = vld [vmem:[%s1114_s1] sm:$0xff]  ;;  %v272_v43 = vadd.s32 4294967272, %v253_v34  ;;  %v256_v47 = vsub.s32 %v253_v34, %v255_v39  ;;  %s540_s29 = sshll.u32 %s1032_s27, 4  ;;  %s1063_s10 = scalar_lea.hbm %s1116_s3, %s635_s28  ;;  %s1065_s29 = int_to_ptr.vmem [resolvable:$true] %s540_s29 }
  0x3e   : > { %v217_v23 = vadd.f32 %v1005_v21, %v1003_v20  ;;  %v241_v25 = vld [vmem:[%s1114_s1 + $0x8] sm:$0xff]  ;;  %v242_v28 = vld [vmem:[%s1114_s1 + $0x10] sm:$0xff]  ;;  %v243_v29 = vld [vmem:[%s1114_s1 + $0x18] sm:$0xff]  ;;  %v261_v41 = vsub.s32 %v258_v36, %v255_v39  ;;  %v268_v45 = vsub.s32 %v265_v38, %v255_v39  ;;  %v457_v34 = vsub.s32 0, %v255_v39  ;;  %s526_s16 = scalar_lea.sflag [#allocation4], %s953_s5  ;;  %s752_s11 = scalar_lea.vmem %s1065_s29, 2048 }
  0x3f   : > { %224 = vadd.xlane.f32.xlu1 %v223_v10  ;;  %v660_v26 = vpack.c.bf16 %v241_v25, %v240_v24  ;;  %v663_v30 = vpack.c.bf16 %v243_v29, %v242_v28  ;;  %v275_v54 = vsub.s32 %v272_v43, %v255_v39  ;;  %v374_v25 = vld [vmem:[%s1115_s2] sm:$0xff]  ;;  %p753_p6 = scmp.ne.s32.totalorder %s1065_s29, %s752_s11  ;;  %p1123_p11 = scmp.ne.s32.totalorder %s1120_s24, 0 }
  0x40   : > { %212 = vadd.xlane.f32.xlu0 %v211_v11  ;;  %655 = vmatpush3.msra.mxu1 %v374_v25  ;;  %s826_s23 = smov [#allocation5]  }
  0x41   : > { %661 = vmatpush3.bf16.msra.mxu0 %v660_v26  ;;  %p754_p12 = pnand %p753_p6, %p1123_p11  ;;  %s756_s4 = sshll.u32 %s826_s23, 4  ;;  %s757_s4 = int_to_ptr.vmem [resolvable:$false] %s756_s4 }
  0x42   : > { %662 = vmatprep.subr.bf16.mxu0 %v823_v27  ;;  %s758_s6 = scalar_lea.vmem %s757_s4, 4096  ;;  %p759_p8 = scmp.lt.s32.totalorder %s1065_s29, %s757_s4 }
  0x43   : > { %227 = vadd.xlane.f32.xlu1 %v226_v16  ;;  %p755_p13 = pneg %p754_p12  ;;  %p760_p10 = scmp.lt.s32.totalorder %s758_s6, %s752_s11 }
  0x44   : > { %215 = vadd.xlane.f32.xlu0 %v214_v17 }
  0x45   : > { %664 = vmatpush3.bf16.msra.mxu0 %v663_v30  ;;  %p761_p0 = por %p760_p10, %p759_p8 }
  0x47   : > { %230 = vadd.xlane.f32.xlu1 %v229_v22  ;;  %p762_p2 = pnand %p761_p0, %p755_p13 }
  0x48   : > { %218 = vadd.xlane.f32.xlu0 %v217_v23 }
  0xc8   : > { %v222_v33 = vpop.xlane.xlu1 %221 }
  0xc9   : > { %v210_v35 = vpop.xlane.xlu0 %209  ;;  %v236_v48 = vmul.f32 0.00390625, %v222_v33 }
  0xca   : > { %v232_v51 = vmul.f32 0.00390625, %v210_v35 }
  0xcb   : > { %v282_v58 = vrot.slane %v236_v48, %v256_v47 }
  0xcc   : > { %v225_v37 = vpop.xlane.xlu1 %224  ;;  %v257_v62 = vrot.slane %v232_v51, %v256_v47 }
  0xcd   : > { %v213_v40 = vpop.xlane.xlu0 %212  ;;  %v237_v42 = vmul.f32 0.00390625, %v225_v37  ;;  %v476_v37 = vsub.s32 1, %v255_v39 }
  0xce   : > { %v233_v44 = vmul.f32 0.00390625, %v213_v40 }
  0xcf   : > { %v286_v53 = vrot.slane %v237_v42, %v261_v41 }
  0xd0   : > { %v228_v46 = vpop.xlane.xlu1 %227  ;;  %v262_v55 = vrot.slane %v233_v44, %v261_v41 }
  0xd1   : > { %v238_v49 = vmul.f32 0.00390625, %v228_v46  ;;  %v216_v50 = vpop.xlane.xlu0 %215  ;;  %v287_v3 = vsel %vm263_vm1, %v286_v53, %v282_v58 }
  0xd2   : > { %v234_v52 = vmul.f32 0.00390625, %v216_v50  ;;  %v264_v10 = vsel %vm263_vm1, %v262_v55, %v257_v62 }
  0xd3   : > { %v291_v56 = vrot.slane %v238_v49, %v268_v45 }
  0xd4   : > { %v231_v57 = vpop.xlane.xlu1 %230  ;;  %v269_v59 = vrot.slane %v234_v52, %v268_v45 }
  0xd5   : > { %v239_v60 = vmul.f32 0.00390625, %v231_v57  ;;  %v219_v61 = vpop.xlane.xlu0 %218  ;;  %v292_v11 = vsel %vm270_vm2, %v291_v56, %v287_v3 }
  0xd6   : > { %v235_v63 = vmul.f32 0.00390625, %v219_v61  ;;  %v271_v17 = vsel %vm270_vm2, %v269_v59, %v264_v10 }
  0xd7   : > { %v296_v7 = vrot.slane %v239_v60, %v275_v54 }
  0xd8   : > { %v276_v16 = vrot.slane %v235_v63, %v275_v54 }
  0xd9   : > { %v297_v22 = vsel %vm277_vm3, %v296_v7, %v292_v11 }
  0xda   : > { %v278_v23 = vsel %vm277_vm3, %v276_v16, %v271_v17 }
  0xdb   : > { %v299_v24 = vsel %vm298_vm4, %v297_v22, %v278_v23 }
  0xdc   : > { %652 = vmatmul.mubr.msk.f32.vlgmr.msra.gmra.mrb[0].mxu0 %vm300_vm5, %v299_v24 }
 0x1af   : > { %v369_v26 = vpop.f32.mrb[0].mxu0 }
 0x1b0   : > { %v373_v27 = vmax.f32 %v369_v26, 0.0  ;;  %v653_v28 = vpop.f32.mrb[1].mxu0 }
 0x1b2   : > { %657 = vmatmul.mubr.msk.f32.vlgmr.msra.gmra.mrb[0].mxu1 %vm375_vm6, %v373_v27 }
 0x285   : > { %v445_v29 = vpop.f32.mrb[0].mxu1 }
 0x286   : > { %v625_v30 = vmul.f32 -1.442695, %v445_v29  ;;  %v658_v31 = vpop.f32.mrb[1].mxu1 }
 0x288   : > { %718 = vpow2.f32 %v625_v30 }
 0x292   : > { %v719_v32 = vpop.eup %718 }
 0x293   : > { %v452_v33 = vadd.f32 1.0, %v719_v32 }
 0x295   : > { %720 = vrcp.f32 %v452_v33 }
 0x29f   : > { %v721_v35 = vpop.eup %720 }
 0x2a0   : > { %v458_v36 = vrot.slane %v721_v35, %v457_v34  ;;  %v477_v38 = vrot.slane %v721_v35, %v476_v37 }
 0x2a2   : > { %464 = vbcast.lane.b32.xlu1 %v458_v36, 264  ;;  %460 = vbcast.lane.b32.xlu0 %v458_v36, 256 }
 0x2a6   : > { %468 = vbcast.lane.b32.xlu1 %v458_v36, 272  ;;  %479 = vbcast.lane.b32.xlu0 %v477_v38, 256 }
 0x2aa   : > { %472 = vbcast.lane.b32.xlu1 %v458_v36, 280  ;;  %487 = vbcast.lane.b32.xlu0 %v477_v38, 272 }
 0x2ae   : > { %483 = vbcast.lane.b32.xlu1 %v477_v38, 264 }
 0x2b2   : > { %491 = vbcast.lane.b32.xlu1 %v477_v38, 280 }
 0x314   : > { %v465_v40 = vpop.permute.xlu1 %464  ;;  %v461_v41 = vpop.permute.xlu0 %460 }
 0x315   : > { %v495_v42 = vmul.f32 %v465_v40, %v979_v8  ;;  %v496_v43 = vmul.f32 %v465_v40, %v981_v9  ;;  %v493_v44 = vmul.f32 %v461_v41, %v967_v2  ;;  %v494_v39 = vmul.f32 %v461_v41, %v971_v4 }
 0x317   : > { %511 = vst [vmem:[%s1032_s27 + $0x10] sm:$0xff] %v495_v42  ;;  %512 = vst [vmem:[%s1032_s27 + $0x18] sm:$0xff] %v496_v43 }
 0x318   : > { %509 = vst [vmem:[%s1032_s27] sm:$0xff] %v493_v44  ;;  %510 = vst [vmem:[%s1032_s27 + $0x8] sm:$0xff] %v494_v39  ;;  %v469_v8 = vpop.permute.xlu1 %468  ;;  %v480_v2 = vpop.permute.xlu0 %479 }
 0x319   : > { %v497_v4 = vmul.f32 %v469_v8, %v991_v14  ;;  %v498_v9 = vmul.f32 %v469_v8, %v993_v15  ;;  %v501_v45 = vmul.f32 %v480_v2, %v963_v0  ;;  %v502_v46 = vmul.f32 %v480_v2, %v965_v1 }
 0x31b   : > { %513 = vst [vmem:[%s1032_s27 + $0x20] sm:$0xff] %v497_v4  ;;  %514 = vst [vmem:[%s1032_s27 + $0x28] sm:$0xff] %v498_v9 }
 0x31c   : > { %517 = vst [vmem:[%s1032_s27 + $0x40] sm:$0xff] %v501_v45  ;;  %518 = vst [vmem:[%s1032_s27 + $0x48] sm:$0xff] %v502_v46  ;;  %v473_v47 = vpop.permute.xlu1 %472  ;;  %v488_v48 = vpop.permute.xlu0 %487 }
 0x31d   : > { %v499_v14 = vmul.f32 %v473_v47, %v1003_v20  ;;  %v500_v49 = vmul.f32 %v473_v47, %v1005_v21  ;;  %v505_v15 = vmul.f32 %v488_v48, %v987_v12  ;;  %v506_v0 = vmul.f32 %v488_v48, %v989_v13 }
 0x31f   : > { %515 = vst [vmem:[%s1032_s27 + $0x30] sm:$0xff] %v499_v14  ;;  %516 = vst [vmem:[%s1032_s27 + $0x38] sm:$0xff] %v500_v49 }
 0x320   : > { %521 = vst [vmem:[%s1032_s27 + $0x60] sm:$0xff] %v505_v15  ;;  %522 = vst [vmem:[%s1032_s27 + $0x68] sm:$0xff] %v506_v0  ;;  %v484_v1 = vpop.permute.xlu1 %483 }
 0x321   : > { %v503_v50 = vmul.f32 %v484_v1, %v973_v5  ;;  %v504_v51 = vmul.f32 %v484_v1, %v975_v6 }
 0x323   : > { %519 = vst [vmem:[%s1032_s27 + $0x50] sm:$0xff] %v503_v50  ;;  %520 = vst [vmem:[%s1032_s27 + $0x58] sm:$0xff] %v504_v51 }
 0x324   : > { %v492_v12 = vpop.permute.xlu1 %491 }
 0x325   : > { %v507_v5 = vmul.f32 %v492_v12, %v999_v18  ;;  %v508_v13 = vmul.f32 %v492_v12, %v1001_v19 }
 0x327   : > { %523 = vst [vmem:[%s1032_s27 + $0x70] sm:$0xff] %v507_v5  ;;  %524 = vst [vmem:[%s1032_s27 + $0x78] sm:$0xff] %v508_v13 }
 0x328   : > { %765 = shalt.err (!%p762_p2)
}
 0x329   : > { %s766_s7 = scalar_lea.hbm %s1063_s10, 2048  ;;  %s770_s19 = scalar_lea.hbm %s1116_s3, 4096 }
 0x32a   : > { %p767_p4 = scmp.ne.s32.totalorder %s1063_s10, %s766_s7  ;;  %p771_p9 = scmp.lt.u32.totalorder %s1063_s10, %s1116_s3 }
 0x32b   : > { %p772_p1 = scmp.lt.u32.totalorder %s770_s19, %s766_s7  ;;  %p774_p6 = scmp.lt.u32.totalorder %s766_s7, %s1063_s10 }
 0x32c   : > { %p768_p5 = pnand %p767_p4, %p1123_p11 }
 0x32d   : > { %p773_p3 = por %p772_p1, %p771_p9 }
 0x32e   : > { %p769_p7 = pneg %p768_p5 }
 0x32f   : > { %p775_p12 = por %p774_p6, %p773_p3 }
 0x331   : > { %p776_p13 = pnand %p775_p12, %p769_p7 }
 0x333   : > { %779 = shalt.err (!%p776_p13)
}
 0x334   : > { %s827_s26 = smov 256   ;;  %s828_s27 = smov 16  }
 0x335   : > { %667 = dma.vmem_to_hbm [thread:$0]  (%p1123_p11), %s1065_s29, 2048, %s1063_s10, %s526_s16, %s827_s26, %s827_s26, %s828_s27  }
 0x336 PF: > { %s555_s28 = sand.u32 1, %s806_s12   ;;  %p1124_p8 = scmp.ne.s32.totalorder %s1121_s25, 0 }
 0x337   : > { %p1125_p10 = scmp.ge.s32.totalorder %s818_s15, 2  ;;  %s556_s30 = scalar_lea.sflag [#allocation4], %s555_s28 }
 0x339   : > { %p674_p0 = pnand %p1125_p10, %p1124_p8 }
 0x33b   : > { %801 = dma.done.wait (!%p674_p0), %s556_s30, 2048  }
 0x33c   : > { %803 = vsyncadd (!%p674_p0), %s556_s30, 4294965248  ;;  %p16_p2 = scmp.ge.s32.totalorder %s874_s18, 4   ;;  %s1126_s12 = smov %s810_s13 }
 0x33d   : > { %s1127_s13 = smov %s814_s14  ;;  %s1128_s14 = smov %s886_s21 }
 0x33e   : > { %s1129_s15 = smov %s874_s18  ;;  %18 = sbr.rel (!%p16_p2) target bundleno = 5 (0x5), region = 77 }
 0x345   :  { %561 = vsyncpa [#allocation3], 1 }
 0x346   :  { %563 = vsyncpa [#allocation3 + $0x1], 1 }
 0x347   :  { %564 = vsyncpa [#allocation4], 1 }
 0x348   :  { %566 = vsyncpa [#allocation4 + $0x1], 1 }

</bundles_post_ra>
